<compile_context>
chip_gen: v7x
topology: tpu7x:2x2x1
jax: 0.10.0
libtpu: 0.0.40
codegen_flags: <defaults>
</compile_context>

<pallas_src>
import functools

import jax
import jax.numpy as jnp
from jax.experimental import pallas as pl
from jax.experimental.pallas import tpu as pltpu

LANES = 128      # lane width: last dim of every slab / block
SUBLANES = 8     # f32 sublanes per vreg (accumulator shape)
TM_MAX = 2048    # block rows -> (2048, 128) f32 = 1 MiB per input block
SUB = 256        # in-kernel sub-chunk rows for the fori_loop accumulation


def _sublane_gran(dtype):
    # sublane packing: f32 -> 8 rows/vreg, bf16 -> 16, int8/fp8 -> 32
    return {4: 8, 2: 16, 1: 32}.get(jnp.dtype(dtype).itemsize, 8)


def _num_parallel_cores():
    """2 on multi-TensorCore chips (v7x) where CORE_PARALLEL splits the grid;
    1 elsewhere (v5e/v6e are single-TC, a core axis is pure overhead)."""
    try:
        dev = jax.devices()[0]
        if dev.platform != "tpu":
            return 1
        kind = str(getattr(dev, "device_kind", "")).lower()
        if "v7" in kind and hasattr(pltpu, "CORE_PARALLEL"):
            return 2
    except Exception:
        pass
    return 1


# --------------------------- per-element values ----------------------------

def _neglog2_values(in_refs, r0, nrows, valid):
    """(nrows, 128) f32 contributions: -log2(v); masked rows contribute 0."""
    (v_ref,) = in_refs
    v = v_ref[pl.ds(r0, nrows), :].astype(jnp.float32)
    if valid is not None:
        v = jnp.where(valid, v, 1.0)       # mask BEFORE log2: -log2(1) == 0
    # TODO(synk): if the single EUP binds on v7x, replace jnp.log2 with an
    # exponent-extract (pltpu.bitcast) + mantissa polynomial on the VPU.
    return -jnp.log2(v)


def _sse_values(in_refs, r0, nrows, valid):
    """(nrows, 128) f32 contributions: (x - t)^2; masked rows contribute 0."""
    x_ref, t_ref = in_refs
    d = (x_ref[pl.ds(r0, nrows), :].astype(jnp.float32)
         - t_ref[pl.ds(r0, nrows), :].astype(jnp.float32))
    if valid is not None:
        d = jnp.where(valid, d, 0.0)       # mask BEFORE squaring
    return d * d


# ------------------------------ Pallas kernel -------------------------------

def _reduce_kernel(*refs, values_fn, tm, rows, bpc, nblocks, mask_from,
                   total_blocks, two_axes):
    """Accumulate per-(sublane, lane) partial sums into a resident (1,8,128)
    f32 output block; the tiny cross-lane reduce happens once in the wrapper."""
    *in_refs, o_ref = refs
    if two_axes:
        step = pl.program_id(1)
        blk = pl.program_id(0) * bpc + step
    else:
        step = pl.program_id(0)
        blk = step

    @pl.when(step == 0)
    def _():
        o_ref[...] = jnp.zeros_like(o_ref)

    def _vreg_sum(vals, nrows):
        # pure-VPU adds: fold row groups of 8 onto a single (8,128) vreg
        return jnp.sum(vals.reshape(nrows // SUBLANES, SUBLANES, LANES), axis=0)

    if mask_from > 0:
        # Fast path: full blocks, no row mask (all but at most the last block).
        @pl.when(blk < mask_from)
        def _():
            if tm > SUB and tm % SUB == 0:
                def body(s, acc):
                    r0 = pl.multiple_of(s * SUB, SUB)
                    return acc + _vreg_sum(values_fn(in_refs, r0, SUB, None), SUB)
                psum = jax.lax.fori_loop(
                    0, tm // SUB, body,
                    jnp.zeros((SUBLANES, LANES), jnp.float32), unroll=True)
            else:
                psum = _vreg_sum(values_fn(in_refs, 0, tm, None), tm)
            o_ref[...] += psum[None]

    if mask_from < total_blocks:
        # Slow path: ragged last block / clamped duplicate blocks -> row mask.
        @pl.when(blk >= mask_from)
        def _():
            ridx = blk * tm + jax.lax.broadcasted_iota(jnp.int32, (tm, LANES), 0)
            vals = values_fn(in_refs, 0, tm, ridx < rows)
            o_ref[...] += _vreg_sum(vals, tm)[None]


# ------------------------------ JAX wrappers --------------------------------

def _prepare(x, pad_value, gran):
    """Flatten x into a lane-dense (rows, 128) slab plus an optional tail.

    * size a multiple of 128 and >= one packed vreg: free reshape, no HBM copy.
    * tiny tensors (< gran*128 elements): neutral-value pad (negligible).
    * otherwise: the kernel reduces the full 128-lane rows and the <128-element
      ragged tail is returned separately for a tiny pure-JAX sum (no full pad).
    """
    flat = jnp.ravel(x)
    n = flat.shape[0]
    min_elems = gran * LANES
    if n < min_elems:
        flat = jnp.pad(flat, (0, min_elems - n), constant_values=pad_value)
        return flat.reshape(gran, LANES), gran, None
    main = (n // LANES) * LANES
    if main == n:
        return flat.reshape(n // LANES, LANES), n // LANES, None
    return flat[:main].reshape(main // LANES, LANES), main // LANES, flat[main:]


def _tiled_reduce(values_fn, slabs, rows, gran):
    """Stream (rows, 128) slabs through the reduce kernel; return f32 scalar."""
    tm = min(TM_MAX, (rows // gran) * gran)       # multiple of gran (>= 8)
    nblocks = pl.cdiv(rows, tm)
    ncores = min(_num_parallel_cores(), nblocks)
    two_axes = ncores > 1
    bpc = pl.cdiv(nblocks, ncores)                # blocks per core
    total_blocks = ncores * bpc
    mask_ragged = (nblocks * tm) != rows
    mask_from = (nblocks - 1) if mask_ragged else nblocks

    if two_axes:
        grid = (ncores, bpc)
        if total_blocks > nblocks:
            # Clamp duplicate trailing blocks; their contribution is masked out.
            def in_map(c, i):
                return (jnp.minimum(c * bpc + i, nblocks - 1), 0)
        else:
            def in_map(c, i):
                return (c * bpc + i, 0)
        out_map = lambda c, i: (c, 0, 0)
        semantics = (pltpu.CORE_PARALLEL, pltpu.ARBITRARY)
    else:
        grid = (nblocks,)
        in_map = lambda i: (i, 0)
        out_map = lambda i: (0, 0, 0)
        semantics = ("arbitrary",)

    kern = functools.partial(
        _reduce_kernel, values_fn=values_fn, tm=tm, rows=rows, bpc=bpc,
        nblocks=nblocks, mask_from=mask_from, total_blocks=total_blocks,
        two_axes=two_axes)

    partials = pl.pallas_call(
        kern,
        out_shape=jax.ShapeDtypeStruct((ncores, SUBLANES, LANES), jnp.float32),
        grid=grid,
        in_specs=[pl.BlockSpec((tm, LANES), in_map)] * len(slabs),
        out_specs=pl.BlockSpec((1, SUBLANES, LANES), out_map),
        compiler_params=pltpu.CompilerParams(dimension_semantics=semantics),
    )(*slabs)
    # Single tiny cross-lane/sublane reduce (ncores*1024 floats) in the wrapper.
    return jnp.sum(partials)


def neg_log2_sum(v):
    gran = _sublane_gran(v.dtype)
    slab, rows, tail = _prepare(v, 1.0, gran)          # pad value 1 -> -log2 = 0
    total = _tiled_reduce(_neglog2_values, [slab], rows, gran)
    if tail is not None:
        total = total + jnp.sum(-jnp.log2(tail.astype(jnp.float32)))
    return total


def sum_squared_error(x, t):
    gran = max(_sublane_gran(x.dtype), _sublane_gran(t.dtype))
    xs, rows, xtail = _prepare(x, 0.0, gran)
    ts, _, ttail = _prepare(t, 0.0, gran)
    total = _tiled_reduce(_sse_values, [xs, ts], rows, gran)
    if xtail is not None:
        d = xtail.astype(jnp.float32) - ttail.astype(jnp.float32)
        total = total + jnp.sum(d * d)
    return total


@functools.partial(jax.jit, static_argnames=("lmbda",))
def hyperprior_loss(x_hat, target, likelihoods, lmbda=0.01):
    """JAX/Pallas equivalent of HyperPriorLoss.forward.

    x_hat, target : (N, C, H, W) floats (NCHW, PyTorch convention)
    likelihoods   : dict[str, array] of probabilities in (0, 1]
    """
    N, C, H, W = target.shape
    num_pixels = N * H * W

    # One small launch per likelihood tensor (no jnp.concatenate HBM round trip).
    bpp_loss = jnp.float32(0.0)
    for _, v in sorted(likelihoods.items()):
        bpp_loss = bpp_loss + neg_log2_sum(v)
    bpp_loss = bpp_loss / jnp.float32(num_pixels)

    sse = sum_squared_error(x_hat, target)
    mse_loss = sse / jnp.float32(N * C * H * W) * jnp.float32(255.0 ** 2)

    loss = jnp.float32(lmbda) * mse_loss + bpp_loss
    return {"loss": loss, "bpp_loss": bpp_loss, "mse_loss": mse_loss}


# ----------------------------------- main -----------------------------------

if __name__ == "__main__":
    key = jax.random.PRNGKey(0)
    k_t, k_n, k_y, k_z = jax.random.split(key, 4)

    # Small shapes consistent with a hyperprior compression model forward:
    #   x_hat / target : (N=2, C=3, H=16, W=16)
    #   likelihoods y  : (2, 4, 4, 4), z : (2, 4, 2, 2), values in (0, 1]
    N, C, H, W = 2, 3, 16, 16
    target = jax.random.uniform(k_t, (N, C, H, W), dtype=jnp.float32)
    x_hat = target + 0.05 * jax.random.normal(k_n, (N, C, H, W), dtype=jnp.float32)

    lik_y = jax.nn.sigmoid(jax.random.normal(k_y, (2, 4, 4, 4), dtype=jnp.float32))
    lik_z = jax.nn.sigmoid(jax.random.normal(k_z, (2, 4, 2, 2), dtype=jnp.float32))
    likelihoods = {"y": lik_y, "z": lik_z}

    out = hyperprior_loss(x_hat, target, likelihoods, lmbda=0.01)
    out = jax.block_until_ready(out)

    # Pure-JAX reference check (same math, no Pallas).
    num_pixels = N * H * W
    ref_bpp = (jnp.sum(-jnp.log2(lik_y)) + jnp.sum(-jnp.log2(lik_z))) / num_pixels
    ref_mse = jnp.mean((x_hat - target) ** 2) * 255.0 ** 2
    ref_loss = 0.01 * ref_mse + ref_bpp

    assert jnp.allclose(out["bpp_loss"], ref_bpp, rtol=1e-5, atol=1e-5)
    assert jnp.allclose(out["mse_loss"], ref_mse, rtol=1e-5, atol=1e-4)
    assert jnp.allclose(out["loss"], ref_loss, rtol=1e-5, atol=1e-4)

    print("KERNEL_OK")
</pallas_src>

<mosaic_0001>
module attributes {stable_mosaic.version = 11 : i64} {
  func.func @_reduce_kernel(%arg0: i32, %arg1: memref<8x128xf32, #tpu.memory_space<vmem>>, %arg2: memref<1x8x128xf32, #tpu.memory_space<vmem>>) attributes {dimension_semantics = [#tpu.dimension_semantics<arbitrary>], iteration_bounds = array<i64: 1>, scalar_prefetch = 0 : i64, scratch_operands = 0 : i64, tpu.core_type = #tpu.core_type<tc>, window_params = [{transform_indices = @transform_0, window_bounds = array<i64: 8, 128>}, {pipeline_mode = #tpu.pipeline_mode<synchronous>, transform_indices = @transform_1, window_bounds = array<i64: 1, 8, 128>}]} {
    %c0_i32 = arith.constant 0 : i32
    %0 = arith.cmpi eq, %arg0, %c0_i32 : i32
    %1 = arith.extui %0 : i1 to i32
    %c0_i32_0 = arith.constant 0 : i32
    %2 = arith.cmpi ne, %1, %c0_i32_0 : i32
    scf.if %2 {
      %cst = arith.constant 0.000000e+00 : f32
      %6 = vector.broadcast %cst : f32 to vector<1x8x128xf32>
      %c0 = arith.constant 0 : index
      %c0_2 = arith.constant 0 : index
      %c0_3 = arith.constant 0 : index
      %7 = vector.load %arg2[%c0, %c0_2, %c0_3] : memref<1x8x128xf32, #tpu.memory_space<vmem>>, vector<1x8x128xf32>
      tpu.vector_store %arg2[%c0, %c0_2, %c0_3], %6 {strides = array<i32>} : memref<1x8x128xf32, #tpu.memory_space<vmem>>, vector<1x8x128xf32>,
    } else {
    }
    %c1_i32 = arith.constant 1 : i32
    %3 = arith.cmpi slt, %arg0, %c1_i32 : i32
    %4 = arith.extui %3 : i1 to i32
    %c0_i32_1 = arith.constant 0 : i32
    %5 = arith.cmpi ne, %4, %c0_i32_1 : i32
    scf.if %5 {
      %c0 = arith.constant 0 : index
      %c0_2 = arith.constant 0 : index
      %6 = vector.load %arg1[%c0, %c0_2] : memref<8x128xf32, #tpu.memory_space<vmem>>, vector<8x128xf32>
      %7 = math.log %6 : vector<8x128xf32>
      %cst = arith.constant 2.000000e+00 : f32
      %8 = math.log %cst : f32
      %9 = vector.broadcast %8 : f32 to vector<8x128xf32>
      %10 = arith.divf %7, %9 : vector<8x128xf32>
      %cst_3 = arith.constant 0.000000e+00 : f32
      %11 = vector.broadcast %cst_3 : f32 to vector<8x128xf32>
      %12 = arith.subf %11, %10 : vector<8x128xf32>
      %13 = vector.shape_cast %12 : vector<8x128xf32> to vector<1x8x128xf32>
      %cst_4 = arith.constant dense<0.000000e+00> : vector<8x128xf32>
      %14 = vector.multi_reduction <add>, %13, %cst_4 [0] : vector<1x8x128xf32> to vector<8x128xf32>
      %c0_5 = arith.constant 0 : index
      %c0_6 = arith.constant 0 : index
      %c0_7 = arith.constant 0 : index
      %15 = vector.load %arg2[%c0_5, %c0_6, %c0_7] : memref<1x8x128xf32, #tpu.memory_space<vmem>>, vector<1x8x128xf32>
      %16 = vector.shape_cast %14 : vector<8x128xf32> to vector<1x8x128xf32>
      %17 = arith.addf %15, %16 : vector<1x8x128xf32>
      %c0_8 = arith.constant 0 : index
      %c0_9 = arith.constant 0 : index
      %c0_10 = arith.constant 0 : index
      %18 = vector.load %arg2[%c0_8, %c0_9, %c0_10] : memref<1x8x128xf32, #tpu.memory_space<vmem>>, vector<1x8x128xf32>
      tpu.vector_store %arg2[%c0_8, %c0_9, %c0_10], %17 {strides = array<i32>} : memref<1x8x128xf32, #tpu.memory_space<vmem>>, vector<1x8x128xf32>,
    } else {
    }
    return
  }
  func.func @transform_0(%arg0: i32) -> (i32, i32) {
    %c0_i32 = arith.constant 0 : i32
    %c0_i32_0 = arith.constant 0 : i32
    return %arg0, %c0_i32 : i32, i32
  }
  func.func @transform_1(%arg0: i32) -> (i32, i32, i32) {
    %c0_i32 = arith.constant 0 : i32
    %c0_i32_0 = arith.constant 0 : i32
    %c0_i32_1 = arith.constant 0 : i32
    %c0_i32_2 = arith.constant 0 : i32
    return %c0_i32, %c0_i32_0, %c0_i32_1 : i32, i32, i32
  }
}

module attributes {stable_mosaic.version = 11 : i64} {
  func.func @_reduce_kernel(%arg0: i32, %arg1: memref<8x128xf32, #tpu.memory_space<vmem>>, %arg2: memref<8x128xf32, #tpu.memory_space<vmem>>, %arg3: memref<1x8x128xf32, #tpu.memory_space<vmem>>) attributes {dimension_semantics = [#tpu.dimension_semantics<arbitrary>], iteration_bounds = array<i64: 2>, scalar_prefetch = 0 : i64, scratch_operands = 0 : i64, tpu.core_type = #tpu.core_type<tc>, window_params = [{transform_indices = @transform_0, window_bounds = array<i64: 8, 128>}, {transform_indices = @transform_1, window_bounds = array<i64: 8, 128>}, {pipeline_mode = #tpu.pipeline_mode<synchronous>, transform_indices = @transform_2, window_bounds = array<i64: 1, 8, 128>}]} {
    %c0_i32 = arith.constant 0 : i32
    %0 = arith.cmpi eq, %arg0, %c0_i32 : i32
    %1 = arith.extui %0 : i1 to i32
    %c0_i32_0 = arith.constant 0 : i32
    %2 = arith.cmpi ne, %1, %c0_i32_0 : i32
    scf.if %2 {
      %cst = arith.constant 0.000000e+00 : f32
      %9 = vector.broadcast %cst : f32 to vector<1x8x128xf32>
      %c0 = arith.constant 0 : index
      %c0_4 = arith.constant 0 : index
      %c0_5 = arith.constant 0 : index
      %10 = vector.load %arg3[%c0, %c0_4, %c0_5] : memref<1x8x128xf32, #tpu.memory_space<vmem>>, vector<1x8x128xf32>
      tpu.vector_store %arg3[%c0, %c0_4, %c0_5], %9 {strides = array<i32>} : memref<1x8x128xf32, #tpu.memory_space<vmem>>, vector<1x8x128xf32>,
    } else {
    }
    %c1_i32 = arith.constant 1 : i32
    %3 = arith.cmpi slt, %arg0, %c1_i32 : i32
    %4 = arith.extui %3 : i1 to i32
    %c0_i32_1 = arith.constant 0 : i32
    %5 = arith.cmpi ne, %4, %c0_i32_1 : i32
    scf.if %5 {
      %c0 = arith.constant 0 : index
      %c0_4 = arith.constant 0 : index
      %9 = vector.load %arg1[%c0, %c0_4] : memref<8x128xf32, #tpu.memory_space<vmem>>, vector<8x128xf32>
      %c0_5 = arith.constant 0 : index
      %c0_6 = arith.constant 0 : index
      %10 = vector.load %arg2[%c0_5, %c0_6] : memref<8x128xf32, #tpu.memory_space<vmem>>, vector<8x128xf32>
      %11 = arith.subf %9, %10 : vector<8x128xf32>
      %12 = arith.mulf %11, %11 : vector<8x128xf32>
      %13 = vector.shape_cast %12 : vector<8x128xf32> to vector<1x8x128xf32>
      %cst = arith.constant dense<0.000000e+00> : vector<8x128xf32>
      %14 = vector.multi_reduction <add>, %13, %cst [0] : vector<1x8x128xf32> to vector<8x128xf32>
      %c0_7 = arith.constant 0 : index
      %c0_8 = arith.constant 0 : index
      %c0_9 = arith.constant 0 : index
      %15 = vector.load %arg3[%c0_7, %c0_8, %c0_9] : memref<1x8x128xf32, #tpu.memory_space<vmem>>, vector<1x8x128xf32>
      %16 = vector.shape_cast %14 : vector<8x128xf32> to vector<1x8x128xf32>
      %17 = arith.addf %15, %16 : vector<1x8x128xf32>
      %c0_10 = arith.constant 0 : index
      %c0_11 = arith.constant 0 : index
      %c0_12 = arith.constant 0 : index
      %18 = vector.load %arg3[%c0_10, %c0_11, %c0_12] : memref<1x8x128xf32, #tpu.memory_space<vmem>>, vector<1x8x128xf32>
      tpu.vector_store %arg3[%c0_10, %c0_11, %c0_12], %17 {strides = array<i32>} : memref<1x8x128xf32, #tpu.memory_space<vmem>>, vector<1x8x128xf32>,
    } else {
    }
    %c1_i32_2 = arith.constant 1 : i32
    %6 = arith.cmpi sge, %arg0, %c1_i32_2 : i32
    %7 = arith.extui %6 : i1 to i32
    %c0_i32_3 = arith.constant 0 : i32
    %8 = arith.cmpi ne, %7, %c0_i32_3 : i32
    scf.if %8 {
      %c8_i32 = arith.constant 8 : i32
      %9 = arith.muli %arg0, %c8_i32 : i32
      %10 = tpu.iota {dimensions = array<i32: 0>} : vector<8x128xi32>
      %11 = vector.broadcast %9 : i32 to vector<8x128xi32>
      %12 = arith.addi %11, %10 : vector<8x128xi32>
      %c12_i32 = arith.constant 12 : i32
      %13 = vector.broadcast %c12_i32 : i32 to vector<8x128xi32>
      %14 = arith.cmpi slt, %12, %13 : vector<8x128xi32>
      %c0 = arith.constant 0 : index
      %c0_4 = arith.constant 0 : index
      %15 = vector.load %arg1[%c0, %c0_4] : memref<8x128xf32, #tpu.memory_space<vmem>>, vector<8x128xf32>
      %c0_5 = arith.constant 0 : index
      %c0_6 = arith.constant 0 : index
      %16 = vector.load %arg2[%c0_5, %c0_6] : memref<8x128xf32, #tpu.memory_space<vmem>>, vector<8x128xf32>
      %17 = arith.subf %15, %16 : vector<8x128xf32>
      %cst = arith.constant 0.000000e+00 : f32
      %18 = vector.broadcast %cst : f32 to vector<8x128xf32>
      %19 = arith.select %14, %17, %18 : vector<8x128xi1>, vector<8x128xf32>
      %20 = arith.mulf %19, %19 : vector<8x128xf32>
      %c0_7 = arith.constant 0 : index
      %c0_8 = arith.constant 0 : index
      %c0_9 = arith.constant 0 : index
      %21 = vector.load %arg3[%c0_7, %c0_8, %c0_9] : memref<1x8x128xf32, #tpu.memory_space<vmem>>, vector<1x8x128xf32>
      %22 = vector.shape_cast %20 : vector<8x128xf32> to vector<1x8x128xf32>
      %cst_10 = arith.constant dense<0.000000e+00> : vector<8x128xf32>
      %23 = vector.multi_reduction <add>, %22, %cst_10 [0] : vector<1x8x128xf32> to vector<8x128xf32>
      %24 = vector.shape_cast %23 : vector<8x128xf32> to vector<1x8x128xf32>
      %25 = arith.addf %21, %24 : vector<1x8x128xf32>
      %c0_11 = arith.constant 0 : index
      %c0_12 = arith.constant 0 : index
      %c0_13 = arith.constant 0 : index
      %26 = vector.load %arg3[%c0_11, %c0_12, %c0_13] : memref<1x8x128xf32, #tpu.memory_space<vmem>>, vector<1x8x128xf32>
      tpu.vector_store %arg3[%c0_11, %c0_12, %c0_13], %25 {strides = array<i32>} : memref<1x8x128xf32, #tpu.memory_space<vmem>>, vector<1x8x128xf32>,
    } else {
    }
    return
  }
  func.func @transform_0(%arg0: i32) -> (i32, i32) {
    %c0_i32 = arith.constant 0 : i32
    %c0_i32_0 = arith.constant 0 : i32
    return %arg0, %c0_i32 : i32, i32
  }
  func.func @transform_1(%arg0: i32) -> (i32, i32) {
    %c0_i32 = arith.constant 0 : i32
    %c0_i32_0 = arith.constant 0 : i32
    return %arg0, %c0_i32 : i32, i32
  }
  func.func @transform_2(%arg0: i32) -> (i32, i32, i32) {
    %c0_i32 = arith.constant 0 : i32
    %c0_i32_0 = arith.constant 0 : i32
    %c0_i32_1 = arith.constant 0 : i32
    %c0_i32_2 = arith.constant 0 : i32
    return %c0_i32, %c0_i32_0, %c0_i32_1 : i32, i32, i32
  }
}

</mosaic_0001>

<bundles_post_ra>
// kernel: hyperprior_loss.3
= control target key start
LH: loop header
LB: loop body
LE: loop exit
PB: predicated region body
PF: predicated region fallthrough
CT: control target
= control target key end

     0   :  { %s50_s0 = inlined_call_operand.vmem [shape: f32[8,128], index: 0, kind: input, shape index: {}]   ;;  %s51_s1 = inlined_call_operand.vmem [shape: f32[1,8,128], index: 1, kind: output, shape index: {}]  }
   0x1   :  { %v17_v0 = vld [vmem:[%s50_s0] sm:$0xff] }
   0x2   :  { %32 = vlog2.f32 %v17_v0 }
   0xc   :  { %v33_v1 = vpop.eup %32 }
   0xd   :  { %v19_v2 = vmul.f32 0.6931472, %v33_v1 }
   0xf   :  { %v21_v3 = vmul.f32 1.442695, %v19_v2 }
  0x11   :  { %v22_v4 = vsub.f32 0.0, %v21_v3 }
  0x13   :  { %26 = vst [vmem:[%s51_s1] sm:$0xff] %v22_v4 }

// kernel: hyperprior_loss.5
= control target key start
LH: loop header
LB: loop body
LE: loop exit
PB: predicated region body
PF: predicated region fallthrough
CT: control target
= control target key end

     0   :  { %s264_s9 = smov 0   ;;  %s307_s0 = inlined_call_operand.vmem [shape: f32[12,128], index: 0, kind: input, shape index: {}]   ;;  %s308_s1 = inlined_call_operand.vmem [shape: f32[12,128], index: 1, kind: input, shape index: {}]   ;;  %s309_s2 = inlined_call_operand.vmem [shape: f32[1,8,128], index: 2, kind: output, shape index: {}]  }
   0x1 LB: > { %s270_s10 = sadd.s32 4294967295, %s246_s9   ;;  %p222_p0 = scmp.ge.s32.totalorder %s246_s9, 1  ;;  %s246_s9 = sphi %s264_s9, %s12_s9  }
   0x2   : > { %p115_p1 = scmp.lt.s32.totalorder %s246_s9, 3 }
   0x4   : > { %p116_p2 = pnand %p222_p0, %p115_p1 }
   0x5   : > { %p135_p3 = scmp.lt.s32.totalorder (!%p116_p2), %s270_s10, 1  ;;  %p225_p4 = scmp.ne.s32.totalorder (!%p116_p2), %s270_s10, 0 }
   0x6   : > { %119 = sbr.rel (%p116_p2) target bundleno = 44 (0x2c), region = 28 }
   0xd   : > { %s136_s11 = scalar_select %p135_p3, %s270_s10, 1 }
   0xe   : > { %146 = sbr.rel (%p225_p4) target bundleno = 21 (0x15), region = 32  ;;  %v248_v0 = vmov (!%p225_p4), 0.0  }
   0xf   : > { %s223_s12 = sshll.u32 %s136_s11, 3  ;;  %147 = vst [vmem:[%s309_s2] sm:$0xff] (!%p225_p4), %v248_v0 }
  0x10   : > { %s138_s15 = scalar_lea.vmem %s307_s0, %s223_s12  ;;  %s142_s18 = scalar_lea.vmem %s308_s1, %s223_s12 }
  0x15 PF: > { %p226_p5 = scmp.ge.s32.totalorder %s270_s10, 1 }
  0x16   : > { %v152_v1 = vld [vmem:[%s138_s15] sm:$0xff] (!%p226_p5) }
  0x17   : > { %151 = sbr.rel (%p226_p5) target bundleno = 31 (0x1f), region = 36  ;;  %v153_v2 = vld [vmem:[%s142_s18] sm:$0xff] (!%p226_p5) }
  0x18   : > { %v154_v3 = vsub.f32 (!%p226_p5), %v152_v1, %v153_v2  ;;  %v157_v4 = vld [vmem:[%s309_s2] sm:$0xff] (!%p226_p5) }
  0x1a   : > { %v155_v5 = vmul.f32 (!%p226_p5), %v154_v3, %v154_v3 }
  0x1c   : > { %v158_v6 = vadd.f32 (!%p226_p5), %v157_v4, %v155_v5 }
  0x1e   : > { %159 = vst [vmem:[%s309_s2] sm:$0xff] %v158_v6 }
  0x1f PF: > { %163 = sbr.rel (%p135_p3) target bundleno = 44 (0x2c), region = 40  ;;  %s228_s25 = sshll.u32 (!%p135_p3), %s270_s10, 3  ;;  %v165_v7 = vlaneseq (!%p135_p3)  ;;  %v170_v8 = vld [vmem:[%s138_s15] sm:$0xff] (!%p135_p3) }
  0x20   : > { %v171_v9 = vld [vmem:[%s142_s18] sm:$0xff] (!%p135_p3)  ;;  %v167_v10 = vstv (!%p135_p3), %s228_s25 }
  0x21   : > { %v166_v11 = vshrl.u32 (!%p135_p3), %v165_v7, 7  ;;  %v172_v12 = vsub.f32 (!%p135_p3), %v170_v8, %v171_v9 }
  0x23   : > { %v168_v13 = vadd.s32 (!%p135_p3), %v167_v10, %v166_v11 }
  0x25   : > { %vm169_vm0 = vcmp.lt.s32.totalorder (!%p135_p3), %v168_v13, 12  ;;  %v175_v15 = vld [vmem:[%s309_s2] sm:$0xff] (!%p135_p3) }
  0x26   : > { %v173_v14 = vsel %vm169_vm0, %v172_v12, 0.0 }
  0x27   : > { %v174_v16 = vmul.f32 %v173_v14, %v173_v14 }
  0x29   : > { %v177_v17 = vadd.f32 %v175_v15, %v174_v16 }
  0x2b   : > { %178 = vst [vmem:[%s309_s2] sm:$0xff] %v177_v17 }
  0x2c PF: > { %s12_s9 = sadd.s32 1, %s246_s9  }
  0x2d   : > { %p9_p6 = scmp.ge.s32.totalorder %s12_s9, 4  }
  0x2f   :  { %11 = sbr.rel (!%p9_p6) target bundleno = 1 (0x1), region = 69 }

</bundles_post_ra>
